<compile_context>
chip_gen: v6e
topology: v6e:2x2x1
jax: 0.10.0
libtpu: 0.0.40
codegen_flags: <defaults>
</compile_context>

<pallas_src>
import functools
import math

import jax
import jax.numpy as jnp
from jax.experimental import pallas as pl
from jax.experimental.pallas import tpu as pltpu


def transformer_kernel(
    x_ref,        # (Bt, S, Din) f32 -- one batch tile of the input
    w_qkv_ref,    # (Din, 3H)   fused  W_emb @ [Wq | Wk | Wv]
    b_qkv_ref,    # (S, 3H)     per-position bias  (b_emb + pos) @ W_qkv + b_qkv
    w_fc_ref,     # (1, H)      fc weight as a row vector
    b_fc_ref,     # (1, 1)      SMEM scalar
    o_ref,        # (Bt, S)     lane-dense output
    *,
    matmul_dtype=jnp.float32,   # set to jnp.bfloat16 on v6e/v7x for 2x MXU throughput
):
    Bt, S, Din = x_ref.shape
    H = w_fc_ref.shape[1]

    # ---- fused embedding + Q/K/V projection: ONE (Bt*S, Din) @ (Din, 3H) MXU matmul
    x2 = x_ref[...].reshape(Bt * S, Din).astype(matmul_dtype)
    qkv = jnp.dot(x2, w_qkv_ref[...].astype(matmul_dtype),
                  preferred_element_type=jnp.float32)
    qkv = qkv.reshape(Bt, S, 3 * H) + b_qkv_ref[...][None, :, :]   # bias + pos encoding
    q = qkv[:, :, 0 * H:1 * H]
    k = qkv[:, :, 1 * H:2 * H]
    v = qkv[:, :, 2 * H:3 * H]

    # ---- single-head scaled dot-product self-attention (softmax kept in f32)
    scale = 1.0 / math.sqrt(H)
    scores = jnp.einsum("bqh,bkh->bqk", q * scale, k,
                        preferred_element_type=jnp.float32)        # (Bt, S, S)
    m = jnp.max(scores, axis=-1, keepdims=True)
    e = jnp.exp(scores - m)
    denom = jnp.sum(e, axis=-1, keepdims=True)
    p = e * pl.reciprocal(denom, approx=True)                      # EUP, not VALU divide
    att = jnp.einsum("bqk,bkh->bqh",
                     p.astype(matmul_dtype), v.astype(matmul_dtype),
                     preferred_element_type=jnp.float32)           # (Bt, S, H)

    # ---- fc (hidden -> 1) as VPU multiply + lane reduce (no N=1 MXU matvec)
    out = jnp.sum(att * w_fc_ref[...][None, :, :], axis=-1) + b_fc_ref[0, 0]
    o_ref[...] = out                                               # (Bt, S), lane-dense


def transformer_forward(x, params, *, matmul_dtype=jnp.float32):
    """x: (B, S, input_dim) -> (S, B), matching PyTorch's (S, B, 1) output .squeeze()."""
    B, S, Din = x.shape
    H = params["w_emb"].shape[1]

    # ---- weight-only precompute in plain JAX (amortized; no per-sample data touched)
    pos = params["pos"][:S, 0, :]                                                # (S, H)
    w_qkv = jnp.concatenate([params["wq"], params["wk"], params["wv"]], axis=1)  # (H, 3H)
    b_qkv = jnp.concatenate([params["bq"], params["bk"], params["bv"]], axis=1)  # (1, 3H)
    w_fused = params["w_emb"] @ w_qkv                                            # (Din, 3H)
    qkv_bias = (params["b_emb"] + pos) @ w_qkv + b_qkv                           # (S, 3H)
    w_fc_row = params["w_fc"].T                                                  # (1, H)
    b_fc = params["b_fc"].reshape(1, 1)

    # batch tile: keep the output block's second-to-last dim == B or a multiple of 8
    if B <= 8:
        Bt = B
    else:
        Bt = 8
        assert B % Bt == 0, "batch must be a multiple of 8 for this tiling"
    grid = (B // Bt,)

    kernel = functools.partial(transformer_kernel, matmul_dtype=matmul_dtype)

    out_bs = pl.pallas_call(
        kernel,
        out_shape=jax.ShapeDtypeStruct((B, S), jnp.float32),
        grid_spec=pltpu.PrefetchScalarGridSpec(
            num_scalar_prefetch=0,
            grid=grid,
            in_specs=[
                pl.BlockSpec((Bt, S, Din), lambda i: (i, 0, 0)),     # x: tiled over batch
                pl.BlockSpec((Din, 3 * H), lambda i: (0, 0)),        # weights: VMEM-resident
                pl.BlockSpec((S, 3 * H), lambda i: (0, 0)),
                pl.BlockSpec((1, H), lambda i: (0, 0)),
                pl.BlockSpec(memory_space=pltpu.MemorySpace.SMEM),   # b_fc scalar in SMEM
            ],
            out_specs=pl.BlockSpec((Bt, S), lambda i: (i, 0)),
        ),
        compiler_params=pltpu.CompilerParams(
            dimension_semantics=("parallel",),        # batch tiles shard across TCs on v7x
            vmem_limit_bytes=32 * 1024 * 1024,        # explicit budget, safe on v5e/v6e/v7x
        ),
    )(x, w_fused, qkv_bias, w_fc_row, b_fc)

    # (B, S) -> (S, B): matches torch output.squeeze() for the (S, B, 1) fc output
    return out_bs.T


def init_params(key, input_dim, hidden_size):
    ks = jax.random.split(key, 12)

    def linear(kw, kb, fan_in, fan_out):
        bound = 1.0 / math.sqrt(fan_in)
        w = jax.random.uniform(kw, (fan_in, fan_out), jnp.float32, -bound, bound)
        b = jax.random.uniform(kb, (1, fan_out), jnp.float32, -bound, bound)
        return w, b

    w_emb, b_emb = linear(ks[0], ks[1], input_dim, hidden_size)
    wq, bq = linear(ks[2], ks[3], hidden_size, hidden_size)
    wk, bk = linear(ks[4], ks[5], hidden_size, hidden_size)
    wv, bv = linear(ks[6], ks[7], hidden_size, hidden_size)
    w_fc, b_fc = linear(ks[8], ks[9], hidden_size, 1)
    pos = jax.random.normal(ks[10], (1000, 1, hidden_size), jnp.float32)

    return dict(w_emb=w_emb, b_emb=b_emb, pos=pos,
                wq=wq, bq=bq, wk=wk, bk=bk, wv=wv, bv=bv,
                w_fc=w_fc, b_fc=b_fc)


def reference_forward(x, params):
    # pure-JAX reference mirroring the PyTorch forward (unfused; for a correctness check)
    B, S, _ = x.shape
    H = params["w_emb"].shape[1]
    xt = jnp.transpose(x, (1, 0, 2))                              # (S, B, Din)
    h = xt @ params["w_emb"] + params["b_emb"][0]
    h = h + params["pos"][:S]                                     # (S, 1, H) broadcast
    q = h @ params["wq"] + params["bq"][0]
    k = h @ params["wk"] + params["bk"][0]
    v = h @ params["wv"] + params["bv"][0]
    scores = jnp.einsum("qbh,kbh->bqk", q, k) / math.sqrt(H)
    p = jax.nn.softmax(scores, axis=-1)
    att = jnp.einsum("bqk,kbh->qbh", p, v)
    out = att @ params["w_fc"] + params["b_fc"][0, 0]             # (S, B, 1)
    return out[:, :, 0]                                           # (S, B)


if __name__ == "__main__":
    B, S, Din, H = 2, 8, 4, 32
    key = jax.random.PRNGKey(0)
    k_x, k_p = jax.random.split(key)
    x = jax.random.normal(k_x, (B, S, Din), jnp.float32)
    params = init_params(k_p, Din, H)

    out = transformer_forward(x, params)
    out = jax.block_until_ready(out)
    assert out.shape == (S, B), out.shape

    ref = reference_forward(x, params)
    # tolerance loosened slightly for the approximate EUP reciprocal in the softmax
    assert jnp.allclose(out, ref, atol=2e-3, rtol=2e-3), "mismatch vs reference"

    print("KERNEL_OK")
</pallas_src>

<mosaic_0001>
module attributes {stable_mosaic.version = 11 : i64} {
  func.func @transformer_kernel(%arg0: i32, %arg1: memref<2x8x4xf32, #tpu.memory_space<vmem>>, %arg2: memref<4x96xf32, #tpu.memory_space<vmem>>, %arg3: memref<8x96xf32, #tpu.memory_space<vmem>>, %arg4: memref<1x32xf32, #tpu.memory_space<vmem>>, %arg5: memref<1x1xf32, #tpu.memory_space<smem>>, %arg6: memref<2x8xf32, #tpu.memory_space<vmem>>) attributes {dimension_semantics = [#tpu.dimension_semantics<parallel>], iteration_bounds = array<i64: 1>, scalar_prefetch = 0 : i64, scratch_operands = 0 : i64, tpu.core_type = #tpu.core_type<tc>, window_params = [{transform_indices = @transform_0, window_bounds = array<i64: 2, 8, 4>}, {pipeline_mode = #tpu.pipeline_mode<synchronous>, transform_indices = @transform_1, window_bounds = array<i64: 4, 96>}, {pipeline_mode = #tpu.pipeline_mode<synchronous>, transform_indices = @transform_2, window_bounds = array<i64: 8, 96>}, {pipeline_mode = #tpu.pipeline_mode<synchronous>, transform_indices = @transform_3, window_bounds = array<i64: 1, 32>}, {transform_indices = @transform_4, window_bounds = array<i64: 1, 1>}, {transform_indices = @transform_5, window_bounds = array<i64: 2, 8>}]} {
    %c0 = arith.constant 0 : index
    %c0_0 = arith.constant 0 : index
    %c0_1 = arith.constant 0 : index
    %0 = vector.load %arg1[%c0, %c0_0, %c0_1] : memref<2x8x4xf32, #tpu.memory_space<vmem>>, vector<2x8x4xf32>
    %1 = vector.shape_cast %0 : vector<2x8x4xf32> to vector<16x4xf32>
    %c0_2 = arith.constant 0 : index
    %c0_3 = arith.constant 0 : index
    %2 = vector.load %arg2[%c0_2, %c0_3] : memref<4x96xf32, #tpu.memory_space<vmem>>, vector<4x96xf32>
    %cst = arith.constant dense<0.000000e+00> : vector<16x96xf32>
    %3 = tpu.matmul %1, %2, %cst {dimension_numbers = #tpu.dot_dimension_numbers<[1], [0], [0], [1], [0, 0, 1, 1], [], []>} : vector<16x4xf32>, vector<4x96xf32>, vector<16x96xf32> -> vector<16x96xf32>
    %4 = vector.shape_cast %3 : vector<16x96xf32> to vector<2x8x96xf32>
    %c0_4 = arith.constant 0 : index
    %c0_5 = arith.constant 0 : index
    %5 = vector.load %arg3[%c0_4, %c0_5] : memref<8x96xf32, #tpu.memory_space<vmem>>, vector<8x96xf32>
    %6 = vector.shape_cast %5 : vector<8x96xf32> to vector<1x8x96xf32>
    %7 = vector.broadcast %6 : vector<1x8x96xf32> to vector<2x8x96xf32>
    %8 = arith.addf %4, %7 : vector<2x8x96xf32>
    %9 = vector.extract_strided_slice %8 {offsets = [0, 0, 0], sizes = [2, 8, 32], strides = [1, 1, 1]} : vector<2x8x96xf32> to vector<2x8x32xf32>
    %10 = vector.extract_strided_slice %8 {offsets = [0, 0, 32], sizes = [2, 8, 32], strides = [1, 1, 1]} : vector<2x8x96xf32> to vector<2x8x32xf32>
    %11 = vector.extract_strided_slice %8 {offsets = [0, 0, 64], sizes = [2, 8, 32], strides = [1, 1, 1]} : vector<2x8x96xf32> to vector<2x8x32xf32>
    %cst_6 = arith.constant 0.176776692 : f32
    %12 = vector.broadcast %cst_6 : f32 to vector<2x8x32xf32>
    %13 = arith.mulf %9, %12 : vector<2x8x32xf32>
    "tpu.trace_start"() <{level = 10 : i32, message = "bqh,bkh->bqk"}> : () -> ()
    %cst_7 = arith.constant dense<0.000000e+00> : vector<2x8x8xf32>
    %14 = tpu.matmul %13, %10, %cst_7 {dimension_numbers = #tpu.dot_dimension_numbers<[2], [2], [1], [1], [0, 0, 0, 1, 1, 1], [0], [0]>} : vector<2x8x32xf32>, vector<2x8x32xf32>, vector<2x8x8xf32> -> vector<2x8x8xf32>
    "tpu.trace_stop"() : () -> ()
    %cst_8 = arith.constant dense<0xFF800000> : vector<2x8xf32>
    %15 = vector.multi_reduction <maximumf>, %14, %cst_8 [2] : vector<2x8x8xf32> to vector<2x8xf32>
    %16 = vector.shape_cast %15 : vector<2x8xf32> to vector<2x8x1xf32>
    %17 = vector.broadcast %16 : vector<2x8x1xf32> to vector<2x8x8xf32>
    %18 = arith.subf %14, %17 : vector<2x8x8xf32>
    %19 = math.exp %18 : vector<2x8x8xf32>
    %cst_9 = arith.constant dense<0.000000e+00> : vector<2x8xf32>
    %20 = vector.multi_reduction <add>, %19, %cst_9 [2] : vector<2x8x8xf32> to vector<2x8xf32>
    %21 = vector.shape_cast %20 : vector<2x8xf32> to vector<2x8x1xf32>
    %22 = tpu.reciprocal %21 {approx = true} : vector<2x8x1xf32> -> vector<2x8x1xf32>
    %23 = vector.broadcast %22 : vector<2x8x1xf32> to vector<2x8x8xf32>
    %24 = arith.mulf %19, %23 : vector<2x8x8xf32>
    "tpu.trace_start"() <{level = 10 : i32, message = "bqk,bkh->bqh"}> : () -> ()
    %cst_10 = arith.constant dense<0.000000e+00> : vector<2x8x32xf32>
    %25 = tpu.matmul %24, %11, %cst_10 {dimension_numbers = #tpu.dot_dimension_numbers<[2], [1], [1], [2], [0, 0, 0, 1, 1, 2], [0], [0]>} : vector<2x8x8xf32>, vector<2x8x32xf32>, vector<2x8x32xf32> -> vector<2x8x32xf32>
    "tpu.trace_stop"() : () -> ()
    %c0_11 = arith.constant 0 : index
    %c0_12 = arith.constant 0 : index
    %26 = vector.load %arg4[%c0_11, %c0_12] : memref<1x32xf32, #tpu.memory_space<vmem>>, vector<1x32xf32>
    %27 = vector.shape_cast %26 : vector<1x32xf32> to vector<1x1x32xf32>
    %28 = vector.broadcast %27 : vector<1x1x32xf32> to vector<2x8x32xf32>
    %29 = arith.mulf %25, %28 : vector<2x8x32xf32>
    %cst_13 = arith.constant dense<0.000000e+00> : vector<2x8xf32>
    %30 = vector.multi_reduction <add>, %29, %cst_13 [2] : vector<2x8x32xf32> to vector<2x8xf32>
    %c0_14 = arith.constant 0 : index
    %c0_15 = arith.constant 0 : index
    %31 = memref.load %arg5[%c0_14, %c0_15] : memref<1x1xf32, #tpu.memory_space<smem>>
    %32 = vector.broadcast %31 : f32 to vector<2x8xf32>
    %33 = arith.addf %30, %32 : vector<2x8xf32>
    %c0_16 = arith.constant 0 : index
    %c0_17 = arith.constant 0 : index
    %34 = vector.load %arg6[%c0_16, %c0_17] : memref<2x8xf32, #tpu.memory_space<vmem>>, vector<2x8xf32>
    tpu.vector_store %arg6[%c0_16, %c0_17], %33 {strides = array<i32>} : memref<2x8xf32, #tpu.memory_space<vmem>>, vector<2x8xf32>,
    return
  }
  func.func @transform_0(%arg0: i32) -> (i32, i32, i32) {
    %c0_i32 = arith.constant 0 : i32
    %c0_i32_0 = arith.constant 0 : i32
    %c0_i32_1 = arith.constant 0 : i32
    return %arg0, %c0_i32, %c0_i32_0 : i32, i32, i32
  }
  func.func @transform_1(%arg0: i32) -> (i32, i32) {
    %c0_i32 = arith.constant 0 : i32
    %c0_i32_0 = arith.constant 0 : i32
    %c0_i32_1 = arith.constant 0 : i32
    return %c0_i32, %c0_i32_0 : i32, i32
  }
  func.func @transform_2(%arg0: i32) -> (i32, i32) {
    %c0_i32 = arith.constant 0 : i32
    %c0_i32_0 = arith.constant 0 : i32
    %c0_i32_1 = arith.constant 0 : i32
    return %c0_i32, %c0_i32_0 : i32, i32
  }
  func.func @transform_3(%arg0: i32) -> (i32, i32) {
    %c0_i32 = arith.constant 0 : i32
    %c0_i32_0 = arith.constant 0 : i32
    %c0_i32_1 = arith.constant 0 : i32
    return %c0_i32, %c0_i32_0 : i32, i32
  }
  func.func @transform_4(%arg0: i32) -> (i32, i32) {
    %c0_i32 = arith.constant 0 : i32
    %c0_i32_0 = arith.constant 0 : i32
    %c0_i32_1 = arith.constant 0 : i32
    return %c0_i32, %c0_i32_0 : i32, i32
  }
  func.func @transform_5(%arg0: i32) -> (i32, i32) {
    %c0_i32 = arith.constant 0 : i32
    %c0_i32_0 = arith.constant 0 : i32
    return %arg0, %c0_i32 : i32, i32
  }
}

</mosaic_0001>

<bundles_post_ra>
// kernel: tpu_custom_call.1
= control target key start
LH: loop header
LB: loop body
LE: loop exit
PB: predicated region body
PF: predicated region fallthrough
CT: control target
= control target key end

     0   :  { %vm32_vm0 = vcmask 1043456   ;;  %vm25_vm1 = vcmask 31744   ;;  %s651_s0 = inlined_call_operand.vmem [shape: f32[2,8,4], index: 0, kind: input, shape index: {}]   ;;  %s652_s1 = inlined_call_operand.vmem [shape: f32[4,96], index: 1, kind: input, shape index: {}]   ;;  %s653_s2 = inlined_call_operand.vmem [shape: f32[8,96], index: 2, kind: input, shape index: {}]   ;;  %s654_s3 = inlined_call_operand.vmem [shape: f32[1,32], index: 3, kind: input, shape index: {}]   ;;  %s655_s4 = inlined_call_operand.<no memory space> [shape: f32[1,1], index: 4, kind: input, shape index: {}]   ;;  %s656_s5 = inlined_call_operand.hbm [shape: f32[2,8], index: 5, kind: output, shape index: {}]  }
   0x1   :  { %v24_v0 = vld [vmem:[%s652_s1] sm:$0xf]  ;;  %v23_v2 = vld [vmem:[%s651_s0 + $0x8] sm:$0xff] }
   0x2   :  { %v22_v1 = vld [vmem:[%s651_s0] sm:$0xff]  ;;  %519 = vmatprep.subr.msk.mxu0 %vm32_vm0, %v24_v0 }
   0x3   :  { %521 = vmatprep.mubr.msk.f32.mxu0 %vm25_vm1, %v22_v1 }
   0x4   :  { %11 = vsyncpa [#allocation4], 0  ;;  %520 = vmatpush3.msk.msra.mxu0 %vm32_vm0, %v24_v0  ;;  %v579_v3 = vmov 0.0   ;;  %vm580_vm2 = vmmov 0   ;;  %v111_v5 = vld [vmem:[%s653_s2] sm:$0xff]  ;;  %s581_s0 = smov 96   ;;  %v469_v46 = vlaneseq  ;;  %v464_v49 = vstv %s655_s4 }
   0x5   :  { %522 = vmatmul.mubr.msk.f32.vlgmr.msra.gmra.mxu0 %vm25_vm1, %v23_v2  ;;  %524 = vmatprep.subr.mxu1 %v579_v3  ;;  %vm119_vm3 = vcmask 261120   ;;  %vm273_vm4 = vcmask 64512   ;;  %s582_s2 = smov 64   ;;  %v507_v37 = vld [vmem:[%s654_s3] ss:$0 sm:$0xff]  ;;  %s583_s3 = smov [#allocation3]  }
   0x6   :  { %529 = vmatprep.subr.mxu0 %v579_v3  ;;  %526 = vmatprep.mubr.msk.f32.mxu1 %vm580_vm2, %v579_v3  ;;  %v470_v47 = vand.u32 127, %v469_v46  ;;  %v472_v48 = vshrl.u32 %v469_v46, 7  ;;  %s490_s29 = sshll.u32 %s583_s3, 4  ;;  %vm479_vm5 = vcmask 1041409   ;;  %vm482_vm6 = vcmask 58368   ;;  %s491_s29 = int_to_ptr.vmem [resolvable:$true] %s490_s29 }
   0x7   :  { %531 = vmatprep.mubr.msk.f32.mxu0 %vm580_vm2, %v579_v3  ;;  %s557_s30 = scalar_lea.vmem %s491_s29, 32  ;;  %p562_p1 = scmp.lt.s32.totalorder %s491_s29, %s491_s29 }
   0x8   :  { %v473_v51 = vsub.s32 %v470_v47, %v472_v48  ;;  %p558_p0 = scmp.ne.s32.totalorder %s491_s29, %s557_s30  ;;  %p563_p2 = scmp.lt.s32.totalorder %s557_s30, %s557_s30 }
   0xa   :  { %p564_p3 = por %p563_p2, %p562_p1 }
   0xc   :  { %p565_p4 = pnand %p564_p3, %p558_p0 }
  0xc5   :  { %v523_v4 = vpop.f32.mrf.mxu0 }
  0xc6   :  { %v113_v8 = vadd.f32 %v523_v4, %v111_v5 }
  0xc7   :  { %v102_v6 = vpop.f32.mrf.mxu0 }
  0xc8   :  { %v112_v7 = vadd.f32 %v111_v5, %v102_v6  ;;  %v115_v12 = vmul.f32 0.17677669, %v113_v8 }
  0xca   :  { %117 = vrot.lane.b32.xlu0 %v112_v7, %s581_s0  ;;  %v114_v10 = vmul.f32 0.17677669, %v112_v7 }
  0xce   :  { %196 = vrot.lane.b32.xlu0 %v113_v8, %s581_s0 }
 0x13c   :  { %v118_v9 = vpop.permute.xlu0 %117 }
 0x13d   :  { %525 = vmatpush3.xpose.msk.msra.mxu1 %vm119_vm3, %v118_v9 }
 0x13e   :  { %534 = vmatprep.subr.mxu1 %v579_v3 }
 0x140   :  { %v197_v11 = vpop.permute.xlu0 %196  ;;  %527 = vmatmul.mubr.msk.f32.vlgmr.msra.gmra.mxu1 %vm119_vm3, %v114_v10 }
 0x141   :  { %530 = vmatpush3.xpose.msk.msra.mxu0 %vm119_vm3, %v197_v11  ;;  %536 = vmatprep.mubr.msk.f32.mxu1 %vm580_vm2, %v579_v3 }
 0x142   :  { %539 = vmatprep.subr.mxu0 %v579_v3 }
 0x144   :  { %532 = vmatmul.mubr.msk.f32.vlgmr.msra.gmra.mxu0 %vm119_vm3, %v115_v12 }
 0x145   :  { %541 = vmatprep.mubr.msk.f32.mxu0 %vm580_vm2, %v579_v3 }
 0x200   :  { %v191_v13 = vpop.f32.mrf.mxu1 }
 0x201   :  { %v274_v14 = vsel %vm273_vm4, %v191_v13, -inf }
 0x202   :  { %275 = vmax.xlane.f32.xlu1 %v274_v14  ;;  %v528_v15 = vpop.f32.mrf.mxu1 }
 0x204   :  { %v269_v16 = vpop.f32.mrf.mxu0 }
 0x205   :  { %v277_v17 = vsel %vm273_vm4, %v269_v16, -inf }
 0x206   :  { %v533_v18 = vpop.f32.mrf.mxu0  ;;  %278 = vmax.xlane.f32.xlu1 %v277_v17 }
 0x28b   :  { %v276_v19 = vpop.xlane.xlu1 %275 }
 0x28c   :  { %v280_v20 = vsub.f32 %v191_v13, %v276_v19 }
 0x28e   :  { %v282_v21 = vmul.f32 1.442695, %v280_v20 }
 0x28f   :  { %v279_v22 = vpop.xlane.xlu1 %278 }
 0x290   :  { %549 = vpow2.f32 %v282_v21  ;;  %v281_v23 = vsub.f32 %v269_v16, %v279_v22 }
 0x292   :  { %v284_v24 = vmul.f32 1.442695, %v281_v23 }
 0x294   :  { %551 = vpow2.f32 %v284_v24 }
 0x29d   :  { %v550_v25 = vpop.eup %549 }
 0x29e   :  { %v286_v26 = vsel %vm273_vm4, %v550_v25, 0.0 }
 0x29f   :  { %287 = vadd.xlane.f32.xlu0 %v286_v26 }
 0x2a1   :  { %v552_v27 = vpop.eup %551 }
 0x2a2   :  { %v289_v28 = vsel %vm273_vm4, %v552_v27, 0.0 }
 0x2a3   :  { %290 = vadd.xlane.f32.xlu1 %v289_v28 }
 0x2b4   :  { %296 = vrot.lane.b32.xlu1 %v112_v7, %s582_s2 }
 0x2b8   :  { %372 = vrot.lane.b32.xlu1 %v113_v8, %s582_s2 }
 0x328   :  { %v288_v29 = vpop.xlane.xlu0 %287 }
 0x329   :  { %553 = vrcp.f32 %v288_v29 }
 0x32c   :  { %v291_v30 = vpop.xlane.xlu1 %290 }
 0x32d   :  { %555 = vrcp.f32 %v291_v30 }
 0x330   :  { %v297_v31 = vpop.permute.xlu1 %296 }
 0x331   :  { %535 = vmatpush3.msra.mxu1 %v297_v31 }
 0x334   :  { %v373_v32 = vpop.permute.xlu1 %372 }
 0x335   :  { %540 = vmatpush3.msra.mxu0 %v373_v32 }
 0x336   :  { %v554_v33 = vpop.eup %553 }
 0x337   :  { %v294_v34 = vmul.f32 %v554_v33, %v550_v25 }
 0x339   :  { %537 = vmatmul.mubr.msk.f32.vlgmr.msra.gmra.mxu1 %vm273_vm4, %v294_v34 }
 0x33a   :  { %v556_v35 = vpop.eup %555 }
 0x33b   :  { %v295_v36 = vmul.f32 %v556_v35, %v552_v27 }
 0x33d   :  { %542 = vmatmul.mubr.msk.f32.vlgmr.msra.gmra.mxu0 %vm273_vm4, %v295_v36 }
 0x3f9   :  { %v368_v38 = vpop.f32.mrf.mxu1 }
 0x3fa   :  { %v455_v39 = vmul.f32 %v507_v37, %v368_v38 }
 0x3fb   :  { %v538_v40 = vpop.f32.mrf.mxu1 }
 0x3fc   :  { %v457_v41 = vsel %vm119_vm3, %v455_v39, 0.0 }
 0x3fd   :  { %v444_v42 = vpop.f32.mrf.mxu0  ;;  %458 = vadd.xlane.f32.xlu1 %v457_v41 }
 0x3fe   :  { %v456_v43 = vmul.f32 %v507_v37, %v444_v42 }
 0x3ff   :  { %v543_v44 = vpop.f32.mrf.mxu0 }
 0x400   :  { %v460_v45 = vsel %vm119_vm3, %v456_v43, 0.0 }
 0x401   :  { %461 = vadd.xlane.f32.xlu0 %v460_v45 }
 0x486   :  { %v459_v50 = vpop.xlane.xlu1 %458 }
 0x487   :  { %v465_v52 = vadd.f32 %v464_v49, %v459_v50 }
 0x489   :  { %v474_v55 = vrot.slane %v465_v52, %v473_v51 }
 0x48a   :  { %v462_v53 = vpop.xlane.xlu0 %461 }
 0x48b   :  { %v466_v54 = vadd.f32 %v464_v49, %v462_v53 }
 0x48d   :  { %v478_v56 = vrot.slane %v466_v54, %v473_v51 }
 0x48f   :  { %v480_v57 = vsel %vm479_vm5, %v478_v56, %v474_v55 }
 0x490   :  { %483 = vst.msk [vmem:[#allocation3] sm:$0x3] %vm482_vm6, %v480_v57 }
 0x491   :  { %568 = shalt.err (!%p565_p4)
}
 0x492   :  { %493 = dma.vmem_to_hbm [thread:$0]  %s491_s29, 32, %s656_s5, [#allocation4]  }
 0x493   :  { %577 = dma.done.wait [#allocation4], 32  }
 0x494   :  { %578 = vsyncadd [#allocation4], 4294967264 }
 0x495   :  { %497 = vsyncpa [#allocation4], 1 }

</bundles_post_ra>
